<compile_context>
chip_gen: v7x
topology: tpu7x:2x2x1
jax: 0.10.0
libtpu: 0.0.40
codegen_flags: <defaults>
</compile_context>

<pallas_src>
import functools

import jax
import jax.numpy as jnp
from jax.experimental import pallas as pl
from jax.experimental.pallas import tpu as pltpu

_OUT_DIM = 6            # true width of final_linear
_OUT_STORE = 8          # stored width per logical row (6 real + 2 zero cols)
_LANES = 128
_VMEM_BUDGET = 48 * 1024 * 1024   # headroom on v7x's 64 MiB VMEM per TC


def _round_up(x, m):
    return ((x + m - 1) // m) * m


def _rotation_vf_kernel(s_ref, w1_ref, b1_ref, w2_ref, b2_ref,
                        w3_ref, b3_ref, w4_ref, b4_ref, out_ref):
    """One row tile of the forward pass.

    s_ref  : (TM, P)      f32 input rows (exact residual source)
    w1..w3 : (P, P)       bf16 hidden weights, [in, out] layout (VMEM resident)
    b1..b3 : (1, P)       f32 biases
    w4_ref : (P, OUT_W)   bf16 final weights (6 real cols per group, rest 0)
    b4_ref : (1, OUT_W)   f32 final bias
    out_ref: (TM, OUT_W)  f32 narrow output
    """
    s = s_ref[...]                    # f32; residual keeps full precision
    bf = jnp.bfloat16

    # linear_1 + relu (bf16 MXU operands, f32 accumulation / elementwise)
    h = jnp.dot(s.astype(bf), w1_ref[...], preferred_element_type=jnp.float32)
    h = jnp.maximum(h + b1_ref[...], 0.0)

    # linear_2 + relu
    h = jnp.dot(h.astype(bf), w2_ref[...], preferred_element_type=jnp.float32)
    h = jnp.maximum(h + b2_ref[...], 0.0)

    # linear_3 + residual (f32 s, exact module semantics)
    h = jnp.dot(h.astype(bf), w3_ref[...], preferred_element_type=jnp.float32)
    h = h + b3_ref[...] + s

    # final_linear (dim -> 6, stored 8-wide per logical row)
    out = jnp.dot(h.astype(bf), w4_ref[...], preferred_element_type=jnp.float32)
    out_ref[...] = out + b4_ref[...]


@functools.partial(jax.jit, static_argnames=("tile_rows",))
def rotation_vf_forward(s, params, tile_rows=4096):
    """s: [..., D] float32.  params: dict of f32 weights/biases (init_params)."""
    orig_shape = s.shape
    D = orig_shape[-1]
    s2d = s.reshape(-1, D)
    N = s2d.shape[0]
    f32, bf = jnp.float32, jnp.bfloat16

    # ---- lane packing: G logical rows per 128-lane kernel row when D | 128 ----
    G = _LANES // D if (D < _LANES and _LANES % D == 0) else 1
    P = G * D                       # packed feature width (128 when packed)
    OUT_W = G * _OUT_STORE          # packed stored-output width

    if G > 1:
        n_logical = _round_up(N, G)
        if n_logical != N:
            # TODO(synk): this small pad is one extra HBM pass over s; only hit
            # when N % G != 0 (at most G-1 rows of padding).
            s2d = jnp.pad(s2d, ((0, n_logical - N), (0, 0)))
        s_rows = s2d.reshape(n_logical // G, P)   # free row-major reshape
    else:
        n_logical = N
        s_rows = s2d
    n_rows = s_rows.shape[0]

    # ---- weight prep (tiny arrays; negligible cost) ----
    # Final layer padded 6 -> 8 columns so each group's output is 8-wide.
    w4p = jnp.zeros((D, _OUT_STORE), f32).at[:, :_OUT_DIM].set(params["w4"])
    b4p = jnp.zeros((1, _OUT_STORE), f32).at[:, :_OUT_DIM].set(params["b4"])
    if G > 1:
        eye = jnp.eye(G, dtype=f32)
        w1 = jnp.kron(eye, params["w1"]).astype(bf)
        w2 = jnp.kron(eye, params["w2"]).astype(bf)
        w3 = jnp.kron(eye, params["w3"]).astype(bf)
        w4 = jnp.kron(eye, w4p).astype(bf)
        b1 = jnp.tile(params["b1"], (1, G))
        b2 = jnp.tile(params["b2"], (1, G))
        b3 = jnp.tile(params["b3"], (1, G))
        b4 = jnp.tile(b4p, (1, G))
    else:
        w1 = params["w1"].astype(bf)
        w2 = params["w2"].astype(bf)
        w3 = params["w3"].astype(bf)
        w4 = w4p.astype(bf)
        b1, b2, b3, b4 = params["b1"], params["b2"], params["b3"], b4p

    # ---- row tile: balanced tiles, multiple of 8, grid >= 2 when possible ----
    n_tiles = max(1, -(-n_rows // int(tile_rows)))
    if n_rows >= 16:
        n_tiles = max(n_tiles, 2)          # keep both v7x TensorCores busy
    tm = _round_up(-(-n_rows // n_tiles), 8)

    # Honest VMEM accounting: every block is double-buffered, weights included.
    weight_bytes = 2 * ((3 * P * P + P * OUT_W) * 2 + (3 * P + OUT_W) * 4)

    def _tile_bytes(t):
        return (2 * t * P * 4                     # double-buffered f32 input
                + 2 * t * OUT_W * 4               # double-buffered f32 output
                + 6 * t * max(P, _LANES) * 4)     # intermediates / casts

    while tm > 8 and weight_bytes + _tile_bytes(tm) > _VMEM_BUDGET:
        tm = max(8, _round_up(tm // 2, 8))
    if tm >= n_rows:
        tm = n_rows                        # single full block (any row count)

    grid = (pl.cdiv(n_rows, tm),)          # ragged edge: OOB writes are masked
    full = lambda shape: pl.BlockSpec(shape, lambda i: (0,) * len(shape))

    out = pl.pallas_call(
        _rotation_vf_kernel,
        out_shape=jax.ShapeDtypeStruct((n_rows, OUT_W), jnp.float32),
        grid_spec=pltpu.PrefetchScalarGridSpec(
            num_scalar_prefetch=0,
            grid=grid,
            in_specs=[
                pl.BlockSpec((tm, P), lambda i: (i, 0)),       # s rows (f32)
                full((P, P)), full((1, P)),                    # w1, b1
                full((P, P)), full((1, P)),                    # w2, b2
                full((P, P)), full((1, P)),                    # w3, b3
                full((P, OUT_W)), full((1, OUT_W)),            # w4, b4
            ],
            out_specs=pl.BlockSpec((tm, OUT_W), lambda i: (i, 0)),
        ),
        compiler_params=pltpu.CompilerParams(
            dimension_semantics=("parallel",),   # megacore-sharded row tiles
            vmem_limit_bytes=_VMEM_BUDGET,
        ),
    )(s_rows, w1, b1, w2, b2, w3, b3, w4, b4)

    out = out.reshape(n_logical, _OUT_STORE)[:N, :_OUT_DIM]
    return out.reshape(*orig_shape[:-1], _OUT_DIM)


def init_params(key, dim):
    """Deterministic synthetic init mirroring the module's __init__ shapes.

    linear_1, linear_2: init='relu'  -> He (scale=2/fan_in); truncated normal
                        approximated by a plain normal (synthetic).
    linear_3:           init='default' -> LeCun (scale=1/fan_in) normal.
    final_linear:       init='final' -> weights=0, bias=0.
    All biases start at 0.  Weights stored as [in_dim, out_dim].
    """
    k1, k2, k3 = jax.random.split(key, 3)
    he_std = (2.0 / dim) ** 0.5
    lecun_std = (1.0 / dim) ** 0.5
    return {
        "w1": jax.random.normal(k1, (dim, dim), jnp.float32) * he_std,
        "b1": jnp.zeros((1, dim), jnp.float32),
        "w2": jax.random.normal(k2, (dim, dim), jnp.float32) * he_std,
        "b2": jnp.zeros((1, dim), jnp.float32),
        "w3": jax.random.normal(k3, (dim, dim), jnp.float32) * lecun_std,
        "b3": jnp.zeros((1, dim), jnp.float32),
        "w4": jnp.zeros((dim, _OUT_DIM), jnp.float32),   # init='final'
        "b4": jnp.zeros((1, _OUT_DIM), jnp.float32),
    }


def _reference_forward_f32(s2d, params):
    """Pure-f32 JAX reference (exact module semantics)."""
    s0 = s2d
    h = jnp.maximum(s2d @ params["w1"] + params["b1"], 0.0)
    h = jnp.maximum(h @ params["w2"] + params["b2"], 0.0)
    h = h @ params["w3"] + params["b3"] + s0
    return h @ params["w4"] + params["b4"]


def _reference_forward_bf16(s2d, params):
    """Reference mirroring the kernel's precision (bf16 MXU, f32 accum/residual)."""
    bf, f32 = jnp.bfloat16, jnp.float32
    h = jnp.dot(s2d.astype(bf), params["w1"].astype(bf), preferred_element_type=f32)
    h = jnp.maximum(h + params["b1"], 0.0)
    h = jnp.dot(h.astype(bf), params["w2"].astype(bf), preferred_element_type=f32)
    h = jnp.maximum(h + params["b2"], 0.0)
    h = jnp.dot(h.astype(bf), params["w3"].astype(bf), preferred_element_type=f32)
    h = h + params["b3"] + s2d                       # f32 residual, like the kernel
    return (jnp.dot(h.astype(bf), params["w4"].astype(bf), preferred_element_type=f32)
            + params["b4"])


if __name__ == "__main__":
    key = jax.random.PRNGKey(0)
    dim = 32
    batch, seq = 2, 8            # leading dims; flattened to N = 16 rows

    kp, kx, kw4, kb4 = jax.random.split(key, 4)
    params = init_params(kp, dim)
    s = jax.random.normal(kx, (batch, seq, dim), jnp.float32)

    # 1) Spec-faithful init (final_linear is zero-init) -> output must be 0.
    out0 = jax.block_until_ready(rotation_vf_forward(s, params))
    assert out0.shape == (batch, seq, _OUT_DIM), out0.shape
    assert jnp.allclose(out0, 0.0), "zero-init final layer must produce zeros"

    # 2) Non-degenerate final layer for a meaningful numeric check.
    params_nz = dict(params)
    params_nz["w4"] = jax.random.normal(kw4, (dim, _OUT_DIM), jnp.float32) * (1.0 / dim) ** 0.5
    params_nz["b4"] = jax.random.normal(kb4, (1, _OUT_DIM), jnp.float32) * 0.1

    out = jax.block_until_ready(rotation_vf_forward(s, params_nz))
    assert out.shape == (batch, seq, _OUT_DIM), out.shape

    s2d = s.reshape(-1, dim)
    ref_bf = _reference_forward_bf16(s2d, params_nz).reshape(batch, seq, _OUT_DIM)
    ref_f32 = _reference_forward_f32(s2d, params_nz).reshape(batch, seq, _OUT_DIM)

    # Tight check vs. a reference with identical (bf16-MXU, f32-accum) precision.
    assert jnp.allclose(out, ref_bf, atol=2e-3, rtol=2e-3), \
        float(jnp.max(jnp.abs(out - ref_bf)))
    # Loose sanity check vs. the pure-f32 module semantics.
    assert jnp.allclose(out, ref_f32, atol=1.5e-1, rtol=1e-1), \
        float(jnp.max(jnp.abs(out - ref_f32)))

    print("KERNEL_OK")
</pallas_src>

<mosaic_0001>
module attributes {stable_mosaic.version = 11 : i64} {
  func.func @_rotation_vf_kernel(%arg0: i32, %arg1: memref<4x128xf32, #tpu.memory_space<vmem>>, %arg2: memref<128x128xbf16, #tpu.memory_space<vmem>>, %arg3: memref<1x128xf32, #tpu.memory_space<vmem>>, %arg4: memref<128x128xbf16, #tpu.memory_space<vmem>>, %arg5: memref<1x128xf32, #tpu.memory_space<vmem>>, %arg6: memref<128x128xbf16, #tpu.memory_space<vmem>>, %arg7: memref<1x128xf32, #tpu.memory_space<vmem>>, %arg8: memref<128x32xbf16, #tpu.memory_space<vmem>>, %arg9: memref<1x32xf32, #tpu.memory_space<vmem>>, %arg10: memref<4x32xf32, #tpu.memory_space<vmem>>) attributes {dimension_semantics = [#tpu.dimension_semantics<parallel>], iteration_bounds = array<i64: 1>, scalar_prefetch = 0 : i64, scratch_operands = 0 : i64, tpu.core_type = #tpu.core_type<tc>, window_params = [{transform_indices = @transform_0, window_bounds = array<i64: 4, 128>}, {pipeline_mode = #tpu.pipeline_mode<synchronous>, transform_indices = @transform_1, window_bounds = array<i64: 128, 128>}, {pipeline_mode = #tpu.pipeline_mode<synchronous>, transform_indices = @transform_2, window_bounds = array<i64: 1, 128>}, {pipeline_mode = #tpu.pipeline_mode<synchronous>, transform_indices = @transform_3, window_bounds = array<i64: 128, 128>}, {pipeline_mode = #tpu.pipeline_mode<synchronous>, transform_indices = @transform_4, window_bounds = array<i64: 1, 128>}, {pipeline_mode = #tpu.pipeline_mode<synchronous>, transform_indices = @transform_5, window_bounds = array<i64: 128, 128>}, {pipeline_mode = #tpu.pipeline_mode<synchronous>, transform_indices = @transform_6, window_bounds = array<i64: 1, 128>}, {pipeline_mode = #tpu.pipeline_mode<synchronous>, transform_indices = @transform_7, window_bounds = array<i64: 128, 32>}, {pipeline_mode = #tpu.pipeline_mode<synchronous>, transform_indices = @transform_8, window_bounds = array<i64: 1, 32>}, {transform_indices = @transform_9, window_bounds = array<i64: 4, 32>}]} {
    %c0 = arith.constant 0 : index
    %c0_0 = arith.constant 0 : index
    %0 = vector.load %arg1[%c0, %c0_0] : memref<4x128xf32, #tpu.memory_space<vmem>>, vector<4x128xf32>
    %1 = arith.truncf %0 : vector<4x128xf32> to vector<4x128xbf16>
    %c0_1 = arith.constant 0 : index
    %c0_2 = arith.constant 0 : index
    %2 = vector.load %arg2[%c0_1, %c0_2] : memref<128x128xbf16, #tpu.memory_space<vmem>>, vector<128x128xbf16>
    %cst = arith.constant dense<0.000000e+00> : vector<4x128xf32>
    %3 = tpu.matmul %1, %2, %cst {dimension_numbers = #tpu.dot_dimension_numbers<[1], [0], [0], [1], [0, 0, 1, 1], [], []>} : vector<4x128xbf16>, vector<128x128xbf16>, vector<4x128xf32> -> vector<4x128xf32>
    %c0_3 = arith.constant 0 : index
    %c0_4 = arith.constant 0 : index
    %4 = vector.load %arg3[%c0_3, %c0_4] : memref<1x128xf32, #tpu.memory_space<vmem>>, vector<1x128xf32>
    %5 = vector.broadcast %4 : vector<1x128xf32> to vector<4x128xf32>
    %6 = arith.addf %3, %5 : vector<4x128xf32>
    %cst_5 = arith.constant 0.000000e+00 : f32
    %7 = vector.broadcast %cst_5 : f32 to vector<4x128xf32>
    %8 = arith.maximumf %6, %7 : vector<4x128xf32>
    %9 = arith.truncf %8 : vector<4x128xf32> to vector<4x128xbf16>
    %c0_6 = arith.constant 0 : index
    %c0_7 = arith.constant 0 : index
    %10 = vector.load %arg4[%c0_6, %c0_7] : memref<128x128xbf16, #tpu.memory_space<vmem>>, vector<128x128xbf16>
    %cst_8 = arith.constant dense<0.000000e+00> : vector<4x128xf32>
    %11 = tpu.matmul %9, %10, %cst_8 {dimension_numbers = #tpu.dot_dimension_numbers<[1], [0], [0], [1], [0, 0, 1, 1], [], []>} : vector<4x128xbf16>, vector<128x128xbf16>, vector<4x128xf32> -> vector<4x128xf32>
    %c0_9 = arith.constant 0 : index
    %c0_10 = arith.constant 0 : index
    %12 = vector.load %arg5[%c0_9, %c0_10] : memref<1x128xf32, #tpu.memory_space<vmem>>, vector<1x128xf32>
    %13 = vector.broadcast %12 : vector<1x128xf32> to vector<4x128xf32>
    %14 = arith.addf %11, %13 : vector<4x128xf32>
    %cst_11 = arith.constant 0.000000e+00 : f32
    %15 = vector.broadcast %cst_11 : f32 to vector<4x128xf32>
    %16 = arith.maximumf %14, %15 : vector<4x128xf32>
    %17 = arith.truncf %16 : vector<4x128xf32> to vector<4x128xbf16>
    %c0_12 = arith.constant 0 : index
    %c0_13 = arith.constant 0 : index
    %18 = vector.load %arg6[%c0_12, %c0_13] : memref<128x128xbf16, #tpu.memory_space<vmem>>, vector<128x128xbf16>
    %cst_14 = arith.constant dense<0.000000e+00> : vector<4x128xf32>
    %19 = tpu.matmul %17, %18, %cst_14 {dimension_numbers = #tpu.dot_dimension_numbers<[1], [0], [0], [1], [0, 0, 1, 1], [], []>} : vector<4x128xbf16>, vector<128x128xbf16>, vector<4x128xf32> -> vector<4x128xf32>
    %c0_15 = arith.constant 0 : index
    %c0_16 = arith.constant 0 : index
    %20 = vector.load %arg7[%c0_15, %c0_16] : memref<1x128xf32, #tpu.memory_space<vmem>>, vector<1x128xf32>
    %21 = vector.broadcast %20 : vector<1x128xf32> to vector<4x128xf32>
    %22 = arith.addf %19, %21 : vector<4x128xf32>
    %23 = arith.addf %22, %0 : vector<4x128xf32>
    %24 = arith.truncf %23 : vector<4x128xf32> to vector<4x128xbf16>
    %c0_17 = arith.constant 0 : index
    %c0_18 = arith.constant 0 : index
    %25 = vector.load %arg8[%c0_17, %c0_18] : memref<128x32xbf16, #tpu.memory_space<vmem>>, vector<128x32xbf16>
    %cst_19 = arith.constant dense<0.000000e+00> : vector<4x32xf32>
    %26 = tpu.matmul %24, %25, %cst_19 {dimension_numbers = #tpu.dot_dimension_numbers<[1], [0], [0], [1], [0, 0, 1, 1], [], []>} : vector<4x128xbf16>, vector<128x32xbf16>, vector<4x32xf32> -> vector<4x32xf32>
    %c0_20 = arith.constant 0 : index
    %c0_21 = arith.constant 0 : index
    %27 = vector.load %arg9[%c0_20, %c0_21] : memref<1x32xf32, #tpu.memory_space<vmem>>, vector<1x32xf32>
    %28 = vector.broadcast %27 : vector<1x32xf32> to vector<4x32xf32>
    %29 = arith.addf %26, %28 : vector<4x32xf32>
    %c0_22 = arith.constant 0 : index
    %c0_23 = arith.constant 0 : index
    %30 = vector.load %arg10[%c0_22, %c0_23] : memref<4x32xf32, #tpu.memory_space<vmem>>, vector<4x32xf32>
    tpu.vector_store %arg10[%c0_22, %c0_23], %29 {strides = array<i32>} : memref<4x32xf32, #tpu.memory_space<vmem>>, vector<4x32xf32>,
    return
  }
  func.func @transform_0(%arg0: i32) -> (i32, i32) {
    %c0_i32 = arith.constant 0 : i32
    %c0_i32_0 = arith.constant 0 : i32
    return %arg0, %c0_i32 : i32, i32
  }
  func.func @transform_1(%arg0: i32) -> (i32, i32) {
    %c0_i32 = arith.constant 0 : i32
    %c0_i32_0 = arith.constant 0 : i32
    %c0_i32_1 = arith.constant 0 : i32
    return %c0_i32, %c0_i32_0 : i32, i32
  }
  func.func @transform_2(%arg0: i32) -> (i32, i32) {
    %c0_i32 = arith.constant 0 : i32
    %c0_i32_0 = arith.constant 0 : i32
    %c0_i32_1 = arith.constant 0 : i32
    return %c0_i32, %c0_i32_0 : i32, i32
  }
  func.func @transform_3(%arg0: i32) -> (i32, i32) {
    %c0_i32 = arith.constant 0 : i32
    %c0_i32_0 = arith.constant 0 : i32
    %c0_i32_1 = arith.constant 0 : i32
    return %c0_i32, %c0_i32_0 : i32, i32
  }
  func.func @transform_4(%arg0: i32) -> (i32, i32) {
    %c0_i32 = arith.constant 0 : i32
    %c0_i32_0 = arith.constant 0 : i32
    %c0_i32_1 = arith.constant 0 : i32
    return %c0_i32, %c0_i32_0 : i32, i32
  }
  func.func @transform_5(%arg0: i32) -> (i32, i32) {
    %c0_i32 = arith.constant 0 : i32
    %c0_i32_0 = arith.constant 0 : i32
    %c0_i32_1 = arith.constant 0 : i32
    return %c0_i32, %c0_i32_0 : i32, i32
  }
  func.func @transform_6(%arg0: i32) -> (i32, i32) {
    %c0_i32 = arith.constant 0 : i32
    %c0_i32_0 = arith.constant 0 : i32
    %c0_i32_1 = arith.constant 0 : i32
    return %c0_i32, %c0_i32_0 : i32, i32
  }
  func.func @transform_7(%arg0: i32) -> (i32, i32) {
    %c0_i32 = arith.constant 0 : i32
    %c0_i32_0 = arith.constant 0 : i32
    %c0_i32_1 = arith.constant 0 : i32
    return %c0_i32, %c0_i32_0 : i32, i32
  }
  func.func @transform_8(%arg0: i32) -> (i32, i32) {
    %c0_i32 = arith.constant 0 : i32
    %c0_i32_0 = arith.constant 0 : i32
    %c0_i32_1 = arith.constant 0 : i32
    return %c0_i32, %c0_i32_0 : i32, i32
  }
  func.func @transform_9(%arg0: i32) -> (i32, i32) {
    %c0_i32 = arith.constant 0 : i32
    %c0_i32_0 = arith.constant 0 : i32
    return %arg0, %c0_i32 : i32, i32
  }
}

</mosaic_0001>

<bundles_post_ra>
// kernel: rotation_vf_forward.1
= control target key start
LH: loop header
LB: loop body
LE: loop exit
PB: predicated region body
PF: predicated region fallthrough
CT: control target
= control target key end

     0   :  { %v677_v0 = vmov 0.0   ;;  %vm678_vm0 = vmmov 0   ;;  %vm485_vm1 = vcmask 257024   ;;  %s888_s1 = inlined_call_operand.vmem [shape: bf16[128,128], index: 1, kind: input, shape index: {}]   ;;  %s889_s3 = inlined_call_operand.vmem [shape: bf16[128,128], index: 3, kind: input, shape index: {}]   ;;  %s890_s0 = inlined_call_operand.vmem [shape: f32[4,128], index: 0, kind: input, shape index: {}]   ;;  %s891_s5 = inlined_call_operand.vmem [shape: bf16[128,128], index: 5, kind: input, shape index: {}]   ;;  %s892_s2 = inlined_call_operand.vmem [shape: f32[1,128], index: 2, kind: input, shape index: {}]   ;;  %s893_s7 = inlined_call_operand.vmem [shape: bf16[128,32], index: 7, kind: input, shape index: {}]   ;;  %s894_s4 = inlined_call_operand.vmem [shape: f32[1,128], index: 4, kind: input, shape index: {}]   ;;  %s895_s6 = inlined_call_operand.vmem [shape: f32[1,128], index: 6, kind: input, shape index: {}]   ;;  %s896_s8 = inlined_call_operand.vmem [shape: f32[1,32], index: 8, kind: input, shape index: {}]   ;;  %s897_s9 = inlined_call_operand.vmem [shape: f32[4,32], index: 9, kind: output, shape index: {}]  }
   0x1   :  { %563 = vmatprep.subr.bf16.mxu0 %v677_v0  ;;  %v645_v1 = vld [vmem:[%s888_s1] sm:$0xff]   ;;  %579 = vmatprep.mubr.msk.bf16.mxu0 %vm678_vm0, %v677_v0  ;;  %v646_v2 = vld [vmem:[%s888_s1 + $0x8] sm:$0xff]   ;;  %v647_v3 = vld [vmem:[%s888_s1 + $0x10] sm:$0xff]  }
   0x2   :  { %583 = vmatprep.subr.bf16.mxu1 %v677_v0  ;;  %599 = vmatprep.mubr.msk.bf16.mxu1 %vm678_vm0, %v677_v0  ;;  %v653_v4 = vld [vmem:[%s889_s3] sm:$0xff]   ;;  %v648_v5 = vld [vmem:[%s888_s1 + $0x18] sm:$0xff]   ;;  %v654_v6 = vld [vmem:[%s889_s3 + $0x8] sm:$0xff]  }
   0x3   :  { %564 = vmatpush3.bf16.msra.mxu0 %v645_v1  ;;  %584 = vmatpush3.bf16.msra.mxu1 %v653_v4  ;;  %v649_v7 = vld [vmem:[%s888_s1 + $0x20] sm:$0xff]   ;;  %v655_v8 = vld [vmem:[%s889_s3 + $0x10] sm:$0xff]   ;;  %v650_v9 = vld [vmem:[%s888_s1 + $0x28] sm:$0xff]  }
   0x4   :  { %565 = vmatprep.subr.bf16.mxu0 %v677_v0  ;;  %585 = vmatprep.subr.bf16.mxu1 %v677_v0  ;;  %v656_v10 = vld [vmem:[%s889_s3 + $0x18] sm:$0xff]   ;;  %v651_v11 = vld [vmem:[%s888_s1 + $0x30] sm:$0xff]   ;;  %v657_v12 = vld [vmem:[%s889_s3 + $0x20] sm:$0xff]  }
   0x5   :  { %v652_v13 = vld [vmem:[%s888_s1 + $0x38] sm:$0xff]   ;;  %v787_v14 = vld [vmem:[%s890_s0] sm:$0xf]  ;;  %v658_v15 = vld [vmem:[%s889_s3 + $0x28] sm:$0xff]  }
   0x6   :  { %v34_v16 = vpack.c.bf16 %v787_v14, %v787_v14  ;;  %v659_v17 = vld [vmem:[%s889_s3 + $0x30] sm:$0xff]   ;;  %v660_v18 = vld [vmem:[%s889_s3 + $0x38] sm:$0xff]   ;;  %v661_v19 = vld [vmem:[%s891_s5] sm:$0xff]  }
   0x7   :  { %566 = vmatpush3.bf16.msra.mxu0 %v646_v2  ;;  %586 = vmatpush3.bf16.msra.mxu1 %v654_v6  ;;  %v662_v20 = vld [vmem:[%s891_s5 + $0x8] sm:$0xff]   ;;  %v663_v21 = vld [vmem:[%s891_s5 + $0x10] sm:$0xff]   ;;  %v664_v22 = vld [vmem:[%s891_s5 + $0x18] sm:$0xff]  }
   0x8   :  { %567 = vmatprep.subr.bf16.mxu0 %v677_v0  ;;  %587 = vmatprep.subr.bf16.mxu1 %v677_v0  ;;  %v665_v23 = vld [vmem:[%s891_s5 + $0x20] sm:$0xff]   ;;  %v666_v24 = vld [vmem:[%s891_s5 + $0x28] sm:$0xff]   ;;  %v667_v33 = vld [vmem:[%s891_s5 + $0x30] sm:$0xff]  }
   0x9   :  { %v491_v25 = vld [vmem:[%s892_s2] ss:$0 sm:$0xff]  ;;  %v668_v34 = vld [vmem:[%s891_s5 + $0x38] sm:$0xff]   ;;  %v670_v36 = vld [vmem:[%s893_s7 + $0x8] sm:$0xff]  }
   0xa   :  { %v669_v35 = vld [vmem:[%s893_s7] sm:$0xff]   ;;  %v671_v37 = vld [vmem:[%s893_s7 + $0x10] sm:$0xff]   ;;  %v672_v38 = vld [vmem:[%s893_s7 + $0x18] sm:$0xff]  }
   0xb   :  { %568 = vmatpush3.bf16.msra.mxu0 %v647_v3  ;;  %588 = vmatpush3.bf16.msra.mxu1 %v655_v8  ;;  %v673_v39 = vld [vmem:[%s893_s7 + $0x20] sm:$0xff]   ;;  %v674_v40 = vld [vmem:[%s893_s7 + $0x28] sm:$0xff]   ;;  %v675_v49 = vld [vmem:[%s893_s7 + $0x30] sm:$0xff]  }
   0xc   :  { %569 = vmatprep.subr.bf16.mxu0 %v677_v0  ;;  %589 = vmatprep.subr.bf16.mxu1 %v677_v0  ;;  %v500_v41 = vld [vmem:[%s894_s4] ss:$0 sm:$0xff]  ;;  %v676_v50 = vld [vmem:[%s893_s7 + $0x38] sm:$0xff]  }
   0xd   :  { %v509_v51 = vld [vmem:[%s895_s6] ss:$0 sm:$0xff] }
   0xe   :  { %v518_v59 = vld [vmem:[%s896_s8] ss:$0 sm:$0xff] }
   0xf   :  { %570 = vmatpush3.bf16.msra.mxu0 %v648_v5  ;;  %590 = vmatpush3.bf16.msra.mxu1 %v656_v10 }
  0x10   :  { %571 = vmatprep.subr.bf16.mxu0 %v677_v0  ;;  %591 = vmatprep.subr.bf16.mxu1 %v677_v0 }
  0x13   :  { %572 = vmatpush3.bf16.msra.mxu0 %v649_v7  ;;  %592 = vmatpush3.bf16.msra.mxu1 %v657_v12 }
  0x14   :  { %573 = vmatprep.subr.bf16.mxu0 %v677_v0  ;;  %593 = vmatprep.subr.bf16.mxu1 %v677_v0 }
  0x17   :  { %574 = vmatpush3.bf16.msra.mxu0 %v650_v9  ;;  %594 = vmatpush3.bf16.msra.mxu1 %v658_v15 }
  0x18   :  { %575 = vmatprep.subr.bf16.mxu0 %v677_v0  ;;  %595 = vmatprep.subr.bf16.mxu1 %v677_v0 }
  0x1b   :  { %576 = vmatpush3.bf16.msra.mxu0 %v651_v11  ;;  %596 = vmatpush3.bf16.msra.mxu1 %v659_v17 }
  0x1c   :  { %577 = vmatprep.subr.bf16.mxu0 %v677_v0  ;;  %597 = vmatprep.subr.bf16.mxu1 %v677_v0 }
  0x1f   :  { %578 = vmatpush3.bf16.msra.mxu0 %v652_v13  ;;  %598 = vmatpush3.bf16.msra.mxu1 %v660_v18 }
  0x20   :  { %603 = vmatprep.subr.bf16.mxu0 %v677_v0  ;;  %623 = vmatprep.subr.bf16.mxu1 %v677_v0 }
  0x22   :  { %580 = vmatmul.mubr.bf16.vlgmr.msra.gmra.mrb[0].mxu0 %v34_v16 }
  0x23   :  { %619 = vmatprep.mubr.msk.bf16.mxu0 %vm678_vm0, %v677_v0  ;;  %604 = vmatpush3.bf16.msra.mxu0 %v661_v19 }
  0x24   :  { %605 = vmatprep.subr.bf16.mxu0 %v677_v0 }
  0x27   :  { %606 = vmatpush3.bf16.msra.mxu0 %v662_v20 }
  0x28   :  { %607 = vmatprep.subr.bf16.mxu0 %v677_v0 }
  0x2b   :  { %608 = vmatpush3.bf16.msra.mxu0 %v663_v21 }
  0x2c   :  { %609 = vmatprep.subr.bf16.mxu0 %v677_v0 }
  0x2f   :  { %610 = vmatpush3.bf16.msra.mxu0 %v664_v22 }
  0x30   :  { %611 = vmatprep.subr.bf16.mxu0 %v677_v0 }
  0x33   :  { %612 = vmatpush3.bf16.msra.mxu0 %v665_v23 }
  0x34   :  { %613 = vmatprep.subr.bf16.mxu0 %v677_v0 }
  0x37   :  { %614 = vmatpush3.bf16.msra.mxu0 %v666_v24 }
  0x38   :  { %615 = vmatprep.subr.bf16.mxu0 %v677_v0 }
  0x3b   :  { %616 = vmatpush3.bf16.msra.mxu0 %v667_v33 }
  0x3c   :  { %617 = vmatprep.subr.bf16.mxu0 %v677_v0 }
  0x3f   :  { %618 = vmatpush3.bf16.msra.mxu0 %v668_v34 }
  0xf5   :  { %v140_v26 = vpop.f32.mrb[0].mxu0 }
  0xf6   :  { %v141_v27 = vadd.f32 %v491_v25, %v140_v26  ;;  %v581_v28 = vpop.f32.mrb[1].mxu0 }
  0xf7   :  { %v143_v29 = vpop.f32.mrb[2].mxu0 }
  0xf8   :  { %v146_v30 = vmax.f32 %v141_v27, 0.0  ;;  %v582_v31 = vpop.f32.mrb[3].mxu0 }
  0xfa   :  { %v147_v32 = vpack.c.bf16 %v146_v30, %v146_v30 }
  0xfc   :  { %600 = vmatmul.mubr.bf16.vlgmr.msra.gmra.mrb[0].mxu1 %v147_v32 }
  0xfd   :  { %639 = vmatprep.mubr.msk.bf16.mxu1 %vm678_vm0, %v677_v0  ;;  %624 = vmatpush3.bf16.msra.mxu1 %v669_v35 }
  0xfe   :  { %625 = vmatprep.subr.bf16.mxu1 %v677_v0 }
 0x101   :  { %626 = vmatpush3.bf16.msra.mxu1 %v670_v36 }
 0x102   :  { %627 = vmatprep.subr.bf16.mxu1 %v677_v0 }
 0x105   :  { %628 = vmatpush3.bf16.msra.mxu1 %v671_v37 }
 0x106   :  { %629 = vmatprep.subr.bf16.mxu1 %v677_v0 }
 0x109   :  { %630 = vmatpush3.bf16.msra.mxu1 %v672_v38 }
 0x10a   :  { %631 = vmatprep.subr.bf16.mxu1 %v677_v0 }
 0x10d   :  { %632 = vmatpush3.bf16.msra.mxu1 %v673_v39 }
 0x10e   :  { %633 = vmatprep.subr.bf16.mxu1 %v677_v0 }
 0x111   :  { %634 = vmatpush3.bf16.msra.mxu1 %v674_v40 }
 0x112   :  { %635 = vmatprep.subr.bf16.mxu1 %v677_v0 }
 0x115   :  { %636 = vmatpush3.bf16.msra.mxu1 %v675_v49 }
 0x116   :  { %637 = vmatprep.subr.bf16.mxu1 %v677_v0 }
 0x119   :  { %638 = vmatpush3.bf16.msra.mxu1 %v676_v50 }
 0x1cf   :  { %v253_v42 = vpop.f32.mrb[0].mxu1 }
 0x1d0   :  { %v254_v43 = vadd.f32 %v500_v41, %v253_v42  ;;  %v601_v44 = vpop.f32.mrb[1].mxu1 }
 0x1d1   :  { %v256_v45 = vpop.f32.mrb[2].mxu1 }
 0x1d2   :  { %v259_v46 = vmax.f32 %v254_v43, 0.0  ;;  %v602_v47 = vpop.f32.mrb[3].mxu1 }
 0x1d4   :  { %v260_v48 = vpack.c.bf16 %v259_v46, %v259_v46 }
 0x1d6   :  { %620 = vmatmul.mubr.bf16.vlgmr.msra.gmra.mrb[4].mxu0 %v260_v48 }
 0x2a9   :  { %v366_v52 = vpop.f32.mrb[4].mxu0 }
 0x2aa   :  { %v367_v53 = vadd.f32 %v509_v51, %v366_v52  ;;  %v621_v54 = vpop.f32.mrb[5].mxu0 }
 0x2ab   :  { %v369_v55 = vpop.f32.mrb[6].mxu0 }
 0x2ac   :  { %v372_v56 = vadd.f32 %v367_v53, %v787_v14  ;;  %v622_v57 = vpop.f32.mrb[7].mxu0 }
 0x2ae   :  { %v373_v58 = vpack.c.bf16 %v372_v56, %v372_v56 }
 0x2b0   :  { %640 = vmatmul.mubr.bf16.vlgmr.msra.gmra.mrb[4].mxu1 %v373_v58 }
 0x383   :  { %v479_v60 = vpop.f32.mrb[4].mxu1 }
 0x384   :  { %v480_v61 = vadd.f32 %v518_v59, %v479_v60  ;;  %v641_v62 = vpop.f32.mrb[5].mxu1 }
 0x385   :  { %v482_v63 = vpop.f32.mrb[6].mxu1 }
 0x386   :  { %486 = vst.msk [vmem:[%s897_s9] sm:$0xf] %vm485_vm1, %v480_v61  ;;  %v642_v0 = vpop.f32.mrb[7].mxu1 }

</bundles_post_ra>
